<compile_context>
chip_gen: v5e
topology: v5e:2x2
jax: 0.10.0
libtpu: 0.0.40
codegen_flags: <defaults>
</compile_context>

<pallas_src>
import jax
import jax.numpy as jnp
from jax.experimental import pallas as pl
from jax.experimental.pallas import tpu as pltpu


def _mlp_kernel(x_ref, w1_ref, b1_ref, w2_ref, b2_ref, w3_ref, b3_ref, o_ref):
    # Fused 3-layer MLP on one batch tile. Matmuls hit the MXU with bf16
    # operands and f32 accumulation; cast / bias / ReLU run on the VPU in f32.
    x = x_ref[...].astype(w1_ref.dtype)          # in-kernel f32 -> bf16 cast
    h1 = jnp.dot(x, w1_ref[...], preferred_element_type=jnp.float32) + b1_ref[...]
    h1 = jnp.maximum(h1, 0.0).astype(w2_ref.dtype)
    h2 = jnp.dot(h1, w2_ref[...], preferred_element_type=jnp.float32) + b2_ref[...]
    h2 = jnp.maximum(h2, 0.0).astype(w3_ref.dtype)
    y = jnp.dot(h2, w3_ref[...], preferred_element_type=jnp.float32) + b3_ref[...]
    o_ref[...] = y.astype(o_ref.dtype)


def data_discriminator_forward(x, params, input_size, *, tm=2048,
                               compute_dtype=jnp.bfloat16):
    """Pallas equivalent of DataDiscriminator.forward.

    x       : any shape reshapeable to (-1, input_size)  (mirrors x.view(...))
    params  : (w1, b1, w2, b2, w3, b3) with weights as (in, out), biases (1, out)
    tm      : target batch tile in rows (rounded down to a multiple of 8).
    Note: x is cast to bf16 inside the kernel for the MXU (input mantissa loss
    is acceptable for a discriminator); accumulation, bias and ReLU stay f32.
    """
    w1, b1, w2, b2, w3, b3 = params
    x2d = x.reshape(-1, input_size)
    n = x2d.shape[0]
    d = w1.shape[0]
    h1 = w1.shape[1]
    h2 = w2.shape[1]
    o = w3.shape[1]

    # ---- batch tiling: no padding; ragged last block handled by Pallas ----
    n_sub = 8 * pl.cdiv(max(n, 1), 8)        # batch rounded up to sublane (8)
    tm_cap = max(8, 8 * (tm // 8))           # tile must be a multiple of 8
    if n_sub < 16:
        tm_eff = n_sub                       # tiny batch: one block, no overhead
    else:
        # Guarantee >= 2 grid steps so both v7x TensorCores get work.
        half = 8 * pl.cdiv(pl.cdiv(n_sub, 2), 8)
        tm_eff = min(tm_cap, half)
    grid = (pl.cdiv(n, tm_eff),)

    # ---- bf16 weights for the MXU; biases stay f32 (post-accumulation add) ----
    w1c, w2c, w3c = (w.astype(compute_dtype) for w in (w1, w2, w3))
    b1f, b2f, b3f = (b.astype(jnp.float32) for b in (b1, b2, b3))

    # ---- per-step VMEM estimate; raise scoped limit only if needed (v5e=16MiB)
    bytes_per_row = (4 * d * 2        # f32 x tile, double-buffered input DMA
                     + 2 * d          # in-kernel bf16 copy of x
                     + 6 * h1         # h1 in f32 + bf16
                     + 6 * h2         # h2 in f32 + bf16
                     + 4 * o * 2)     # f32 output tile, double-buffered
    weight_bytes = 2 * (d * h1 + h1 * h2 + h2 * o) + 4 * (h1 + h2 + o)
    vmem_est = tm_eff * bytes_per_row + 2 * weight_bytes
    vmem_limit = None
    if vmem_est > 12 * 1024 * 1024:
        vmem_limit = min(int(1.5 * vmem_est), 56 * 1024 * 1024)  # < v7x physical

    out = pl.pallas_call(
        _mlp_kernel,
        out_shape=jax.ShapeDtypeStruct((n, o), jnp.float32),
        grid=grid,
        in_specs=[
            pl.BlockSpec((tm_eff, d), lambda i: (i, 0)),   # x tile (batch-tiled, f32)
            pl.BlockSpec((d, h1), lambda i: (0, 0)),       # W1 (full, resident)
            pl.BlockSpec((1, h1), lambda i: (0, 0)),       # b1
            pl.BlockSpec((h1, h2), lambda i: (0, 0)),      # W2
            pl.BlockSpec((1, h2), lambda i: (0, 0)),       # b2
            pl.BlockSpec((h2, o), lambda i: (0, 0)),       # W3 (unpadded, 2 lanes)
            pl.BlockSpec((1, o), lambda i: (0, 0)),        # b3
        ],
        out_specs=pl.BlockSpec((tm_eff, o), lambda i: (i, 0)),
        compiler_params=pltpu.CompilerParams(
            dimension_semantics=("parallel",),
            vmem_limit_bytes=vmem_limit),
    )(x2d, w1c, b1f, w2c, b2f, w3c, b3f)

    return out


def init_params(key, input_size, exp_size, hl1_size=128, hl2_size=64, output_size=2):
    """Deterministic PyTorch-style init: U(-1/sqrt(fan_in), 1/sqrt(fan_in)).

    Weights are stored as (in_features, out_features) (i.e. W.T of nn.Linear),
    biases as (1, out_features) for TPU-friendly 2D layout.
    """
    d = input_size + exp_size
    dims = [(d, hl1_size), (hl1_size, hl2_size), (hl2_size, output_size)]
    params = []
    keys = jax.random.split(key, 2 * len(dims))
    for li, (fan_in, fan_out) in enumerate(dims):
        bound = 1.0 / jnp.sqrt(float(fan_in))
        w = jax.random.uniform(keys[2 * li], (fan_in, fan_out), jnp.float32,
                               minval=-bound, maxval=bound)
        b = jax.random.uniform(keys[2 * li + 1], (1, fan_out), jnp.float32,
                               minval=-bound, maxval=bound)
        params += [w, b]
    return tuple(params)


def _reference_forward_f32(x, params, input_size):
    w1, b1, w2, b2, w3, b3 = params
    x2d = x.reshape(-1, input_size).astype(jnp.float32)
    h1 = jnp.maximum(x2d @ w1 + b1, 0.0)
    h2 = jnp.maximum(h1 @ w2 + b2, 0.0)
    return h2 @ w3 + b3


def _reference_forward_bf16(x, params, input_size, compute_dtype=jnp.bfloat16):
    # Same mixed precision as the kernel: bf16 operands, f32 accumulation.
    w1, b1, w2, b2, w3, b3 = params
    x2d = x.reshape(-1, input_size).astype(compute_dtype)
    h1 = jnp.dot(x2d, w1.astype(compute_dtype),
                 preferred_element_type=jnp.float32) + b1
    h1 = jnp.maximum(h1, 0.0)
    h2 = jnp.dot(h1.astype(compute_dtype), w2.astype(compute_dtype),
                 preferred_element_type=jnp.float32) + b2
    h2 = jnp.maximum(h2, 0.0)
    return jnp.dot(h2.astype(compute_dtype), w3.astype(compute_dtype),
                   preferred_element_type=jnp.float32) + b3


if __name__ == "__main__":
    # Small, module-consistent shapes.
    input_size = 24
    exp_size = 8
    total_in = input_size + exp_size  # = self.input_size in the module

    key = jax.random.PRNGKey(0)
    kx, kx2, kp = jax.random.split(key, 3)
    params = init_params(kp, input_size, exp_size,
                         hl1_size=128, hl2_size=64, output_size=2)

    # Case 1: tiny batch -> single block, no grid overhead, no padding.
    batch = 8
    x = jax.random.normal(kx, (batch, total_in), jnp.float32)
    out = jax.block_until_ready(data_discriminator_forward(x, params, total_in))
    assert out.shape == (batch, 2)
    ref_bf16 = _reference_forward_bf16(x, params, total_in)
    ref_f32 = _reference_forward_f32(x, params, total_in)
    assert jnp.allclose(out, ref_bf16, atol=2e-3, rtol=2e-3), "mismatch vs bf16 reference"
    assert jnp.allclose(out, ref_f32, atol=5e-2, rtol=5e-2), "mismatch vs f32 reference"

    # Case 2: higher-rank input (exercises view(-1, D)) with a batch (20) that
    # is not a multiple of the tile -> 2 grid steps, ragged masked last block.
    x2 = jax.random.normal(kx2, (5, 2, 2, total_in), jnp.float32)  # 20 rows
    out2 = jax.block_until_ready(data_discriminator_forward(x2, params, total_in))
    assert out2.shape == (20, 2)
    ref2 = _reference_forward_bf16(x2, params, total_in)
    assert jnp.allclose(out2, ref2, atol=2e-3, rtol=2e-3), "mismatch (ragged batch)"

    print("KERNEL_OK")
</pallas_src>

<mosaic_0001>
module attributes {stable_mosaic.version = 11 : i64} {
  func.func @_mlp_kernel(%arg0: i32, %arg1: memref<8x32xf32, #tpu.memory_space<vmem>>, %arg2: memref<32x128xbf16, #tpu.memory_space<vmem>>, %arg3: memref<1x128xf32, #tpu.memory_space<vmem>>, %arg4: memref<128x64xbf16, #tpu.memory_space<vmem>>, %arg5: memref<1x64xf32, #tpu.memory_space<vmem>>, %arg6: memref<64x2xbf16, #tpu.memory_space<vmem>>, %arg7: memref<1x2xf32, #tpu.memory_space<vmem>>, %arg8: memref<8x2xf32, #tpu.memory_space<vmem>>) attributes {dimension_semantics = [#tpu.dimension_semantics<parallel>], iteration_bounds = array<i64: 1>, scalar_prefetch = 0 : i64, scratch_operands = 0 : i64, tpu.core_type = #tpu.core_type<tc>, window_params = [{transform_indices = @transform_0, window_bounds = array<i64: 8, 32>}, {pipeline_mode = #tpu.pipeline_mode<synchronous>, transform_indices = @transform_1, window_bounds = array<i64: 32, 128>}, {pipeline_mode = #tpu.pipeline_mode<synchronous>, transform_indices = @transform_2, window_bounds = array<i64: 1, 128>}, {pipeline_mode = #tpu.pipeline_mode<synchronous>, transform_indices = @transform_3, window_bounds = array<i64: 128, 64>}, {pipeline_mode = #tpu.pipeline_mode<synchronous>, transform_indices = @transform_4, window_bounds = array<i64: 1, 64>}, {pipeline_mode = #tpu.pipeline_mode<synchronous>, transform_indices = @transform_5, window_bounds = array<i64: 64, 2>}, {pipeline_mode = #tpu.pipeline_mode<synchronous>, transform_indices = @transform_6, window_bounds = array<i64: 1, 2>}, {transform_indices = @transform_7, window_bounds = array<i64: 8, 2>}]} {
    %c0 = arith.constant 0 : index
    %c0_0 = arith.constant 0 : index
    %0 = vector.load %arg1[%c0, %c0_0] : memref<8x32xf32, #tpu.memory_space<vmem>>, vector<8x32xf32>
    %1 = arith.truncf %0 : vector<8x32xf32> to vector<8x32xbf16>
    %c0_1 = arith.constant 0 : index
    %c0_2 = arith.constant 0 : index
    %2 = vector.load %arg2[%c0_1, %c0_2] : memref<32x128xbf16, #tpu.memory_space<vmem>>, vector<32x128xbf16>
    %cst = arith.constant dense<0.000000e+00> : vector<8x128xf32>
    %3 = tpu.matmul %1, %2, %cst {dimension_numbers = #tpu.dot_dimension_numbers<[1], [0], [0], [1], [0, 0, 1, 1], [], []>} : vector<8x32xbf16>, vector<32x128xbf16>, vector<8x128xf32> -> vector<8x128xf32>
    %c0_3 = arith.constant 0 : index
    %c0_4 = arith.constant 0 : index
    %4 = vector.load %arg3[%c0_3, %c0_4] : memref<1x128xf32, #tpu.memory_space<vmem>>, vector<1x128xf32>
    %5 = vector.broadcast %4 : vector<1x128xf32> to vector<8x128xf32>
    %6 = arith.addf %3, %5 : vector<8x128xf32>
    %cst_5 = arith.constant 0.000000e+00 : f32
    %7 = vector.broadcast %cst_5 : f32 to vector<8x128xf32>
    %8 = arith.maximumf %6, %7 : vector<8x128xf32>
    %9 = arith.truncf %8 : vector<8x128xf32> to vector<8x128xbf16>
    %c0_6 = arith.constant 0 : index
    %c0_7 = arith.constant 0 : index
    %10 = vector.load %arg4[%c0_6, %c0_7] : memref<128x64xbf16, #tpu.memory_space<vmem>>, vector<128x64xbf16>
    %cst_8 = arith.constant dense<0.000000e+00> : vector<8x64xf32>
    %11 = tpu.matmul %9, %10, %cst_8 {dimension_numbers = #tpu.dot_dimension_numbers<[1], [0], [0], [1], [0, 0, 1, 1], [], []>} : vector<8x128xbf16>, vector<128x64xbf16>, vector<8x64xf32> -> vector<8x64xf32>
    %c0_9 = arith.constant 0 : index
    %c0_10 = arith.constant 0 : index
    %12 = vector.load %arg5[%c0_9, %c0_10] : memref<1x64xf32, #tpu.memory_space<vmem>>, vector<1x64xf32>
    %13 = vector.broadcast %12 : vector<1x64xf32> to vector<8x64xf32>
    %14 = arith.addf %11, %13 : vector<8x64xf32>
    %cst_11 = arith.constant 0.000000e+00 : f32
    %15 = vector.broadcast %cst_11 : f32 to vector<8x64xf32>
    %16 = arith.maximumf %14, %15 : vector<8x64xf32>
    %17 = arith.truncf %16 : vector<8x64xf32> to vector<8x64xbf16>
    %c0_12 = arith.constant 0 : index
    %c0_13 = arith.constant 0 : index
    %18 = vector.load %arg6[%c0_12, %c0_13] : memref<64x2xbf16, #tpu.memory_space<vmem>>, vector<64x2xbf16>
    %cst_14 = arith.constant dense<0.000000e+00> : vector<8x2xf32>
    %19 = tpu.matmul %17, %18, %cst_14 {dimension_numbers = #tpu.dot_dimension_numbers<[1], [0], [0], [1], [0, 0, 1, 1], [], []>} : vector<8x64xbf16>, vector<64x2xbf16>, vector<8x2xf32> -> vector<8x2xf32>
    %c0_15 = arith.constant 0 : index
    %c0_16 = arith.constant 0 : index
    %20 = vector.load %arg7[%c0_15, %c0_16] : memref<1x2xf32, #tpu.memory_space<vmem>>, vector<1x2xf32>
    %21 = vector.broadcast %20 : vector<1x2xf32> to vector<8x2xf32>
    %22 = arith.addf %19, %21 : vector<8x2xf32>
    %c0_17 = arith.constant 0 : index
    %c0_18 = arith.constant 0 : index
    %23 = vector.load %arg8[%c0_17, %c0_18] : memref<8x2xf32, #tpu.memory_space<vmem>>, vector<8x2xf32>
    tpu.vector_store %arg8[%c0_17, %c0_18], %22 {strides = array<i32>} : memref<8x2xf32, #tpu.memory_space<vmem>>, vector<8x2xf32>,
    return
  }
  func.func @transform_0(%arg0: i32) -> (i32, i32) {
    %c0_i32 = arith.constant 0 : i32
    %c0_i32_0 = arith.constant 0 : i32
    return %arg0, %c0_i32 : i32, i32
  }
  func.func @transform_1(%arg0: i32) -> (i32, i32) {
    %c0_i32 = arith.constant 0 : i32
    %c0_i32_0 = arith.constant 0 : i32
    %c0_i32_1 = arith.constant 0 : i32
    return %c0_i32, %c0_i32_0 : i32, i32
  }
  func.func @transform_2(%arg0: i32) -> (i32, i32) {
    %c0_i32 = arith.constant 0 : i32
    %c0_i32_0 = arith.constant 0 : i32
    %c0_i32_1 = arith.constant 0 : i32
    return %c0_i32, %c0_i32_0 : i32, i32
  }
  func.func @transform_3(%arg0: i32) -> (i32, i32) {
    %c0_i32 = arith.constant 0 : i32
    %c0_i32_0 = arith.constant 0 : i32
    %c0_i32_1 = arith.constant 0 : i32
    return %c0_i32, %c0_i32_0 : i32, i32
  }
  func.func @transform_4(%arg0: i32) -> (i32, i32) {
    %c0_i32 = arith.constant 0 : i32
    %c0_i32_0 = arith.constant 0 : i32
    %c0_i32_1 = arith.constant 0 : i32
    return %c0_i32, %c0_i32_0 : i32, i32
  }
  func.func @transform_5(%arg0: i32) -> (i32, i32) {
    %c0_i32 = arith.constant 0 : i32
    %c0_i32_0 = arith.constant 0 : i32
    %c0_i32_1 = arith.constant 0 : i32
    return %c0_i32, %c0_i32_0 : i32, i32
  }
  func.func @transform_6(%arg0: i32) -> (i32, i32) {
    %c0_i32 = arith.constant 0 : i32
    %c0_i32_0 = arith.constant 0 : i32
    %c0_i32_1 = arith.constant 0 : i32
    return %c0_i32, %c0_i32_0 : i32, i32
  }
  func.func @transform_7(%arg0: i32) -> (i32, i32) {
    %c0_i32 = arith.constant 0 : i32
    %c0_i32_0 = arith.constant 0 : i32
    return %arg0, %c0_i32 : i32, i32
  }
}

</mosaic_0001>

<bundles_post_ra>
// kernel: tpu_custom_call.1
= control target key start
LH: loop header
LB: loop body
LE: loop exit
PB: predicated region body
PF: predicated region fallthrough
CT: control target
= control target key end

     0   :  { %vm49_vm0 = vcmask 261120   ;;  %vm187_vm1 = vcmask 523264   ;;  %vm204_vm2 = vcmask 15360   ;;  %s382_s1 = inlined_call_operand.vmem [shape: bf16[32,128], index: 1, kind: input, shape index: {}]   ;;  %s383_s0 = inlined_call_operand.vmem [shape: f32[8,32], index: 0, kind: input, shape index: {}]   ;;  %s384_s3 = inlined_call_operand.vmem [shape: bf16[128,64], index: 3, kind: input, shape index: {}]   ;;  %s385_s2 = inlined_call_operand.vmem [shape: f32[1,128], index: 2, kind: input, shape index: {}]   ;;  %s386_s4 = inlined_call_operand.vmem [shape: f32[1,64], index: 4, kind: input, shape index: {}]   ;;  %s387_s5 = inlined_call_operand.vmem [shape: bf16[64,2], index: 5, kind: input, shape index: {}]   ;;  %s388_s6 = inlined_call_operand.vmem [shape: f32[1,2], index: 6, kind: input, shape index: {}]   ;;  %s389_s7 = inlined_call_operand.vmem [shape: f32[8,2], index: 7, kind: output, shape index: {}]  }
   0x1   :  { %v269_v0 = vld [vmem:[%s382_s1 + $0x8] sm:$0xff]  ;;  %v277_v1 = vld [vmem:[%s384_s3 + $0x38] sm:$0xff]  ;;  %v268_v2 = vld [vmem:[%s382_s1] sm:$0xff] }
   0x2   :  { %59 = vmatpush.bf16.msra.mxu0 %v269_v0  ;;  %v27_v3 = vld [vmem:[%s383_s0] sm:$0xff]  ;;  %136 = vmatpush.bf16.msra.mxu1 %v277_v1  ;;  %v276_v4 = vld [vmem:[%s384_s3 + $0x30] sm:$0xff]  ;;  %v275_v6 = vld [vmem:[%s384_s3 + $0x28] sm:$0xff] }
   0x3   :  { %v28_v5 = vpack.c.bf16 %v27_v3, %v27_v3  ;;  %v274_v7 = vld [vmem:[%s384_s3 + $0x20] sm:$0xff]  ;;  %v273_v8 = vld [vmem:[%s384_s3 + $0x18] sm:$0xff]  ;;  %v272_v9 = vld [vmem:[%s384_s3 + $0x10] sm:$0xff] }
   0x4   :  { %v271_v10 = vld [vmem:[%s384_s3 + $0x8] sm:$0xff]  ;;  %v270_v11 = vld [vmem:[%s384_s3] sm:$0xff]  ;;  %v281_v12 = vld [vmem:[%s387_s5 + $0x18] sm:$0xff] }
   0x5   :  { %195 = vmatpush.bf16.msra.mxu2 %v281_v12  ;;  %v280_v13 = vld [vmem:[%s387_s5 + $0x10] sm:$0xff]  ;;  %v282_v14 = vld [vmem:[%s385_s2] ss:$0 sm:$0xff]  ;;  %v279_v20 = vld [vmem:[%s387_s5 + $0x8] sm:$0xff] }
   0x6   :  { %60 = vmatpush.bf16.msra.mxu0 %v268_v2  ;;  %137 = vmatpush.bf16.msra.mxu1 %v276_v4  ;;  %v278_v21 = vld [vmem:[%s387_s5] sm:$0xff] }
   0x7   :  { %v283_v22 = vld [vmem:[%s386_s4] ss:$0 sm:$0xff] }
   0x8   :  { %v284_v28 = vld [vmem:[%s388_s6] ss:$0 sm:$0xff] }
   0x9   :  { %218 = vmatmul.msk.bf16.vlgmr.msra.gmra.mxu0 %vm49_vm0, %v28_v5  ;;  %196 = vmatpush.bf16.msra.mxu2 %v280_v13 }
   0xa   :  { %138 = vmatpush.bf16.msra.mxu1 %v275_v6 }
   0xd   :  { %197 = vmatpush.bf16.msra.mxu2 %v279_v20 }
   0xe   :  { %139 = vmatpush.bf16.msra.mxu1 %v274_v7 }
  0x11   :  { %198 = vmatpush.bf16.msra.mxu2 %v278_v21 }
  0x12   :  { %140 = vmatpush.bf16.msra.mxu1 %v273_v8 }
  0x16   :  { %141 = vmatpush.bf16.msra.mxu1 %v272_v9 }
  0x1a   :  { %142 = vmatpush.bf16.msra.mxu1 %v271_v10 }
  0x1e   :  { %143 = vmatpush.bf16.msra.mxu1 %v270_v11 }
  0x86   :  { %v62_v15 = vpop.f32.mrf.mxu0 }
  0x87   :  { %v63_v16 = vadd.f32 %v282_v14, %v62_v15 }
  0x89   :  { %v66_v17 = vmax.f32 %v63_v16, 0.0 }
  0x8b   :  { %v67_v18 = vpack.c.bf16 %v66_v17, %v66_v17 }
  0x8d   :  { %144 = vmatmul.bf16.vlgmr.msra.gmra.mxu1 %v67_v18 }
  0x8e   :  { %v64_v19 = vpop.f32.mrf.mxu0 }
 0x10a   :  { %v145_v23 = vpop.f32.mrf.mxu1 }
 0x10b   :  { %v146_v24 = vadd.f32 %v283_v22, %v145_v23 }
 0x10d   :  { %v149_v25 = vmax.f32 %v146_v24, 0.0 }
 0x10f   :  { %v150_v26 = vpack.c.bf16 %v149_v25, %v149_v25 }
 0x111   :  { %267 = vmatmul.msk.bf16.vlgmr.msra.gmra.mxu2 %vm187_vm1, %v150_v26 }
 0x112   :  { %v147_v27 = vpop.f32.mrf.mxu1 }
 0x194   :  { %v200_v29 = vpop.f32.mrf.mxu2 }
 0x195   :  { %v201_v30 = vadd.f32 %v284_v28, %v200_v29 }
 0x197   :  { %205 = vst.msk [vmem:[%s389_s7] sm:$0xff] %vm204_vm2, %v201_v30 }
 0x19c   :  { %v202_v31 = vpop.f32.mrf.mxu2 }

</bundles_post_ra>
